<compile_context>
chip_gen: v7x
topology: tpu7x:2x2x1
jax: 0.10.0
libtpu: 0.0.40
codegen_flags: <defaults>
</compile_context>

<pallas_src>
import math

import jax
import jax.numpy as jnp
from jax.experimental import pallas as pl
from jax.experimental.pallas import tpu as pltpu

_LANE = 128


def _hsm_label_kernel(lt_ref, lb_ref,            # scalar-prefetch (SMEM)
                      x_ref, wt_ref, bt_ref, wb_ref, bb_ref,   # inputs (VMEM)
                      out_ref):                  # output (VMEM)
    # x_ref:  (1, nhid, 1)   current batch row, as a column vector
    # wt_ref: (nhid, C)      top-layer weights (resident across the grid)
    # bt_ref: (1, C)         top-layer bias
    # wb_ref: (1, nhid, T)   bottom-layer weights of THIS row's class (gathered)
    # bb_ref: (1, 1, T)      bottom-layer bias of THIS row's class (gathered)
    # out_ref:(1, 1, 128)    lane-dense per-row output (scalar broadcast)
    i = pl.program_id(0)
    lt = lt_ref[i]            # class index of this row
    lb = lb_ref[i]            # within-class token index of this row

    xcol = x_ref[0]           # (nhid, 1) f32

    # ---- top softmax, probability of this row's class ----------------------
    # VPU broadcast-multiply + sublane reduce (keep the tiny matvec off the MXU)
    top_logits = jnp.sum(xcol * wt_ref[...], axis=0, keepdims=True) + bt_ref[...]   # (1, C)
    tmax = jnp.max(top_logits, axis=-1, keepdims=True)
    te = jnp.exp(top_logits - tmax)
    tden = jnp.sum(te, axis=-1, keepdims=True)
    tsel = jax.lax.broadcasted_iota(jnp.int32, te.shape, 1) == lt
    top_p = jnp.sum(jnp.where(tsel, te, 0.0), axis=-1, keepdims=True) / tden        # (1, 1)

    # ---- bottom softmax over the gathered class, prob of this row's token --
    bot_logits = jnp.sum(xcol * wb_ref[0], axis=0, keepdims=True) + bb_ref[0]       # (1, T)
    bmax = jnp.max(bot_logits, axis=-1, keepdims=True)
    be = jnp.exp(bot_logits - bmax)
    bden = jnp.sum(be, axis=-1, keepdims=True)
    bsel = jax.lax.broadcasted_iota(jnp.int32, be.shape, 1) == lb
    bot_p = jnp.sum(jnp.where(bsel, be, 0.0), axis=-1, keepdims=True) / bden        # (1, 1)

    # Lane-dense store: broadcast the scalar across the padded 128-lane row.
    out_ref[...] = jnp.broadcast_to(top_p * bot_p, out_ref.shape)


def hierarchical_softmax_forward(inputs, labels, W_top, b_top, W_bot, b_bot):
    """Pallas-backed HierarchicalSoftmax forward (labels path). Returns (B,) f32."""
    B, nhid = inputs.shape
    C = W_top.shape[1]            # nclasses
    T = W_bot.shape[2]            # ntokens_per_class

    lt = (labels // T).astype(jnp.int32)   # label_position_top
    lb = (labels % T).astype(jnp.int32)    # label_position_bottom

    x3 = inputs.astype(jnp.float32).reshape(B, nhid, 1)
    wt = W_top.astype(jnp.float32)
    bt = b_top.astype(jnp.float32).reshape(1, C)
    wb = W_bot.astype(jnp.float32)
    bb = b_bot.astype(jnp.float32).reshape(C, 1, T)

    out = pl.pallas_call(
        _hsm_label_kernel,
        out_shape=jax.ShapeDtypeStruct((B, 1, _LANE), jnp.float32),
        grid_spec=pltpu.PrefetchScalarGridSpec(
            num_scalar_prefetch=2,
            grid=(B,),
            in_specs=[
                # current batch row (column vector)
                pl.BlockSpec((1, nhid, 1), lambda i, lt, lb: (i, 0, 0)),
                # top-layer weights / bias: constant block index -> stays in VMEM
                pl.BlockSpec((nhid, C), lambda i, lt, lb: (0, 0)),
                pl.BlockSpec((1, C), lambda i, lt, lb: (0, 0)),
                # fused data-dependent gather of this row's class block
                pl.BlockSpec((1, nhid, T), lambda i, lt, lb: (lt[i], 0, 0)),
                pl.BlockSpec((1, 1, T), lambda i, lt, lb: (lt[i], 0, 0)),
            ],
            out_specs=pl.BlockSpec((1, 1, _LANE), lambda i, lt, lb: (i, 0, 0)),
        ),
        compiler_params=pltpu.CompilerParams(
            dimension_semantics=("parallel",)),
        cost_estimate=pl.CostEstimate(
            flops=2 * B * nhid * (C + T),
            transcendentals=B * (C + T),
            bytes_accessed=4 * (B * nhid + nhid * C + C
                                + B * (nhid * T + T) + B * _LANE),
        ),
    )(lt, lb, x3, wt, bt, wb, bb)

    return out[:, 0, 0]


def hierarchical_softmax_reference(inputs, labels, W_top, b_top, W_bot, b_bot):
    """Pure-JAX reference matching the PyTorch labels-path semantics."""
    T = W_bot.shape[2]
    B = inputs.shape[0]
    lt = labels // T
    lb = labels % T
    top_logits = inputs @ W_top + b_top
    top_probs = jax.nn.softmax(top_logits, axis=1)
    bot_logits = jnp.einsum("bh,bht->bt", inputs, W_bot[lt]) + b_bot[lt]
    bot_probs = jax.nn.softmax(bot_logits, axis=1)
    return top_probs[jnp.arange(B), lt] * bot_probs[jnp.arange(B), lb]


if __name__ == "__main__":
    # Small shapes consistent with the module defaults.
    ntokens = 60
    nhid = 32
    batch = 8
    ntokens_per_class = int(math.ceil(math.sqrt(ntokens)))              # 8
    nclasses = int(math.ceil(ntokens * 1.0 / ntokens_per_class))        # 8

    key = jax.random.PRNGKey(0)
    k_wt, k_wb, k_x, k_lab = jax.random.split(key, 4)

    initrange = 0.1
    W_top = jax.random.uniform(k_wt, (nhid, nclasses), jnp.float32,
                               minval=-initrange, maxval=initrange)
    b_top = jnp.zeros((nclasses,), jnp.float32)
    W_bot = jax.random.uniform(k_wb, (nclasses, nhid, ntokens_per_class), jnp.float32,
                               minval=-initrange, maxval=initrange)
    b_bot = jnp.zeros((nclasses, ntokens_per_class), jnp.float32)

    inputs = jax.random.normal(k_x, (batch, nhid), jnp.float32)
    labels = jax.random.randint(k_lab, (batch,), 0, ntokens, dtype=jnp.int32)

    got = jax.block_until_ready(
        hierarchical_softmax_forward(inputs, labels, W_top, b_top, W_bot, b_bot))
    ref = jax.block_until_ready(
        hierarchical_softmax_reference(inputs, labels, W_top, b_top, W_bot, b_bot))

    assert got.shape == (batch,), got.shape
    assert jnp.allclose(got, ref, rtol=1e-5, atol=1e-6), (got, ref)
    print("KERNEL_OK")
</pallas_src>

<mosaic_0001>
module attributes {stable_mosaic.version = 11 : i64} {
  func.func @_hsm_label_kernel(%arg0: i32, %arg1: memref<8xi32, #tpu.memory_space<smem>>, %arg2: memref<8xi32, #tpu.memory_space<smem>>, %arg3: memref<1x32x1xf32, #tpu.memory_space<vmem>>, %arg4: memref<32x8xf32, #tpu.memory_space<vmem>>, %arg5: memref<1x8xf32, #tpu.memory_space<vmem>>, %arg6: memref<1x32x8xf32, #tpu.memory_space<vmem>>, %arg7: memref<1x1x8xf32, #tpu.memory_space<vmem>>, %arg8: memref<1x1x128xf32, #tpu.memory_space<vmem>>) attributes {dimension_semantics = [#tpu.dimension_semantics<parallel>], iteration_bounds = array<i64: 8>, scalar_prefetch = 2 : i64, scratch_operands = 0 : i64, tpu.core_type = #tpu.core_type<tc>, window_params = [{transform_indices = @transform_0, window_bounds = array<i64: 1, 32, 1>}, {pipeline_mode = #tpu.pipeline_mode<synchronous>, transform_indices = @transform_1, window_bounds = array<i64: 32, 8>}, {pipeline_mode = #tpu.pipeline_mode<synchronous>, transform_indices = @transform_2, window_bounds = array<i64: 1, 8>}, {transform_indices = @transform_3, window_bounds = array<i64: 1, 32, 8>}, {transform_indices = @transform_4, window_bounds = array<i64: 1, 1, 8>}, {transform_indices = @transform_5, window_bounds = array<i64: 1, 1, 128>}]} {
    %0 = arith.index_cast %arg0 : i32 to index
    %1 = memref.load %arg1[%0] : memref<8xi32, #tpu.memory_space<smem>>
    %2 = arith.index_cast %arg0 : i32 to index
    %3 = memref.load %arg2[%2] : memref<8xi32, #tpu.memory_space<smem>>
    %c0 = arith.constant 0 : index
    %c0_0 = arith.constant 0 : index
    %c0_1 = arith.constant 0 : index
    %4 = vector.load %arg3[%c0, %c0_0, %c0_1] : memref<1x32x1xf32, #tpu.memory_space<vmem>>, vector<1x32x1xf32>
    %5 = vector.shape_cast %4 : vector<1x32x1xf32> to vector<32x1xf32>
    %c0_2 = arith.constant 0 : index
    %c0_3 = arith.constant 0 : index
    %6 = vector.load %arg4[%c0_2, %c0_3] : memref<32x8xf32, #tpu.memory_space<vmem>>, vector<32x8xf32>
    %7 = vector.broadcast %5 : vector<32x1xf32> to vector<32x8xf32>
    %8 = arith.mulf %7, %6 : vector<32x8xf32>
    %cst = arith.constant dense<0.000000e+00> : vector<8xf32>
    %9 = vector.multi_reduction <add>, %8, %cst [0] : vector<32x8xf32> to vector<8xf32>
    %10 = vector.shape_cast %9 : vector<8xf32> to vector<1x8xf32>
    %c0_4 = arith.constant 0 : index
    %c0_5 = arith.constant 0 : index
    %11 = vector.load %arg5[%c0_4, %c0_5] : memref<1x8xf32, #tpu.memory_space<vmem>>, vector<1x8xf32>
    %12 = arith.addf %10, %11 : vector<1x8xf32>
    %cst_6 = arith.constant dense<0xFF800000> : vector<1xf32>
    %13 = vector.multi_reduction <maximumf>, %12, %cst_6 [1] : vector<1x8xf32> to vector<1xf32>
    %14 = vector.shape_cast %13 : vector<1xf32> to vector<1x1xf32>
    %15 = vector.broadcast %14 : vector<1x1xf32> to vector<1x8xf32>
    %16 = arith.subf %12, %15 : vector<1x8xf32>
    %17 = math.exp %16 : vector<1x8xf32>
    %cst_7 = arith.constant dense<0.000000e+00> : vector<1xf32>
    %18 = vector.multi_reduction <add>, %17, %cst_7 [1] : vector<1x8xf32> to vector<1xf32>
    %19 = vector.shape_cast %18 : vector<1xf32> to vector<1x1xf32>
    %20 = tpu.iota {dimensions = array<i32: 1>} : vector<1x8xi32>
    %21 = vector.broadcast %1 : i32 to vector<1x8xi32>
    %22 = arith.cmpi eq, %20, %21 : vector<1x8xi32>
    %cst_8 = arith.constant 0.000000e+00 : f32
    %23 = vector.broadcast %cst_8 : f32 to vector<1x8xf32>
    %24 = arith.select %22, %17, %23 : vector<1x8xi1>, vector<1x8xf32>
    %cst_9 = arith.constant dense<0.000000e+00> : vector<1xf32>
    %25 = vector.multi_reduction <add>, %24, %cst_9 [1] : vector<1x8xf32> to vector<1xf32>
    %26 = vector.shape_cast %25 : vector<1xf32> to vector<1x1xf32>
    %27 = arith.divf %26, %19 : vector<1x1xf32>
    %c0_10 = arith.constant 0 : index
    %c0_11 = arith.constant 0 : index
    %c0_12 = arith.constant 0 : index
    %28 = vector.load %arg6[%c0_10, %c0_11, %c0_12] : memref<1x32x8xf32, #tpu.memory_space<vmem>>, vector<1x32x8xf32>
    %29 = vector.shape_cast %28 : vector<1x32x8xf32> to vector<32x8xf32>
    %30 = vector.broadcast %5 : vector<32x1xf32> to vector<32x8xf32>
    %31 = arith.mulf %30, %29 : vector<32x8xf32>
    %cst_13 = arith.constant dense<0.000000e+00> : vector<8xf32>
    %32 = vector.multi_reduction <add>, %31, %cst_13 [0] : vector<32x8xf32> to vector<8xf32>
    %33 = vector.shape_cast %32 : vector<8xf32> to vector<1x8xf32>
    %c0_14 = arith.constant 0 : index
    %c0_15 = arith.constant 0 : index
    %c0_16 = arith.constant 0 : index
    %34 = vector.load %arg7[%c0_14, %c0_15, %c0_16] : memref<1x1x8xf32, #tpu.memory_space<vmem>>, vector<1x1x8xf32>
    %35 = vector.shape_cast %34 : vector<1x1x8xf32> to vector<1x8xf32>
    %36 = arith.addf %33, %35 : vector<1x8xf32>
    %cst_17 = arith.constant dense<0xFF800000> : vector<1xf32>
    %37 = vector.multi_reduction <maximumf>, %36, %cst_17 [1] : vector<1x8xf32> to vector<1xf32>
    %38 = vector.shape_cast %37 : vector<1xf32> to vector<1x1xf32>
    %39 = vector.broadcast %38 : vector<1x1xf32> to vector<1x8xf32>
    %40 = arith.subf %36, %39 : vector<1x8xf32>
    %41 = math.exp %40 : vector<1x8xf32>
    %cst_18 = arith.constant dense<0.000000e+00> : vector<1xf32>
    %42 = vector.multi_reduction <add>, %41, %cst_18 [1] : vector<1x8xf32> to vector<1xf32>
    %43 = vector.shape_cast %42 : vector<1xf32> to vector<1x1xf32>
    %44 = tpu.iota {dimensions = array<i32: 1>} : vector<1x8xi32>
    %45 = vector.broadcast %3 : i32 to vector<1x8xi32>
    %46 = arith.cmpi eq, %44, %45 : vector<1x8xi32>
    %cst_19 = arith.constant 0.000000e+00 : f32
    %47 = vector.broadcast %cst_19 : f32 to vector<1x8xf32>
    %48 = arith.select %46, %41, %47 : vector<1x8xi1>, vector<1x8xf32>
    %cst_20 = arith.constant dense<0.000000e+00> : vector<1xf32>
    %49 = vector.multi_reduction <add>, %48, %cst_20 [1] : vector<1x8xf32> to vector<1xf32>
    %50 = vector.shape_cast %49 : vector<1xf32> to vector<1x1xf32>
    %51 = arith.divf %50, %43 : vector<1x1xf32>
    %52 = arith.mulf %27, %51 : vector<1x1xf32>
    %53 = vector.shape_cast %52 : vector<1x1xf32> to vector<1x1x1xf32>
    %54 = vector.broadcast %53 : vector<1x1x1xf32> to vector<1x1x128xf32>
    %c0_21 = arith.constant 0 : index
    %c0_22 = arith.constant 0 : index
    %c0_23 = arith.constant 0 : index
    %55 = vector.load %arg8[%c0_21, %c0_22, %c0_23] : memref<1x1x128xf32, #tpu.memory_space<vmem>>, vector<1x1x128xf32>
    tpu.vector_store %arg8[%c0_21, %c0_22, %c0_23], %54 {strides = array<i32>} : memref<1x1x128xf32, #tpu.memory_space<vmem>>, vector<1x1x128xf32>,
    return
  }
  func.func @transform_0(%arg0: i32, %arg1: memref<8xi32, #tpu.memory_space<smem>>, %arg2: memref<8xi32, #tpu.memory_space<smem>>) -> (i32, i32, i32) {
    %c0_i32 = arith.constant 0 : i32
    %c0_i32_0 = arith.constant 0 : i32
    %c0_i32_1 = arith.constant 0 : i32
    return %arg0, %c0_i32, %c0_i32_0 : i32, i32, i32
  }
  func.func @transform_1(%arg0: i32, %arg1: memref<8xi32, #tpu.memory_space<smem>>, %arg2: memref<8xi32, #tpu.memory_space<smem>>) -> (i32, i32) {
    %c0_i32 = arith.constant 0 : i32
    %c0_i32_0 = arith.constant 0 : i32
    %c0_i32_1 = arith.constant 0 : i32
    return %c0_i32, %c0_i32_0 : i32, i32
  }
  func.func @transform_2(%arg0: i32, %arg1: memref<8xi32, #tpu.memory_space<smem>>, %arg2: memref<8xi32, #tpu.memory_space<smem>>) -> (i32, i32) {
    %c0_i32 = arith.constant 0 : i32
    %c0_i32_0 = arith.constant 0 : i32
    %c0_i32_1 = arith.constant 0 : i32
    return %c0_i32, %c0_i32_0 : i32, i32
  }
  func.func @transform_3(%arg0: i32, %arg1: memref<8xi32, #tpu.memory_space<smem>>, %arg2: memref<8xi32, #tpu.memory_space<smem>>) -> (i32, i32, i32) {
    %0 = arith.index_cast %arg0 : i32 to index
    %1 = memref.load %arg1[%0] : memref<8xi32, #tpu.memory_space<smem>>
    %c0_i32 = arith.constant 0 : i32
    %c0_i32_0 = arith.constant 0 : i32
    %c0_i32_1 = arith.constant 0 : i32
    return %1, %c0_i32, %c0_i32_0 : i32, i32, i32
  }
  func.func @transform_4(%arg0: i32, %arg1: memref<8xi32, #tpu.memory_space<smem>>, %arg2: memref<8xi32, #tpu.memory_space<smem>>) -> (i32, i32, i32) {
    %0 = arith.index_cast %arg0 : i32 to index
    %1 = memref.load %arg1[%0] : memref<8xi32, #tpu.memory_space<smem>>
    %c0_i32 = arith.constant 0 : i32
    %c0_i32_0 = arith.constant 0 : i32
    %c0_i32_1 = arith.constant 0 : i32
    return %1, %c0_i32, %c0_i32_0 : i32, i32, i32
  }
  func.func @transform_5(%arg0: i32, %arg1: memref<8xi32, #tpu.memory_space<smem>>, %arg2: memref<8xi32, #tpu.memory_space<smem>>) -> (i32, i32, i32) {
    %c0_i32 = arith.constant 0 : i32
    %c0_i32_0 = arith.constant 0 : i32
    %c0_i32_1 = arith.constant 0 : i32
    return %arg0, %c0_i32, %c0_i32_0 : i32, i32, i32
  }
}

</mosaic_0001>

<bundles_post_ra>
// kernel: tpu_custom_call.1
= control target key start
LH: loop header
LB: loop body
LE: loop exit
PB: predicated region body
PF: predicated region fallthrough
CT: control target
= control target key end

     0   :  { %s827_s0 = inlined_call_operand.vmem [shape: s32[8], index: 0, kind: input, shape index: {}]   ;;  %s828_s2 = inlined_call_operand.vmem [shape: f32[8,32,1], index: 2, kind: input, shape index: {}]   ;;  %s829_s3 = inlined_call_operand.vmem [shape: f32[32,8], index: 3, kind: input, shape index: {}]   ;;  %s830_s4 = inlined_call_operand.vmem [shape: f32[1,8], index: 4, kind: input, shape index: {}]   ;;  %s831_s5 = inlined_call_operand.vmem [shape: f32[8,32,8], index: 5, kind: input, shape index: {}]   ;;  %s832_s6 = inlined_call_operand.vmem [shape: f32[8,1,8], index: 6, kind: input, shape index: {}]   ;;  %s833_s7 = inlined_call_operand.hbm [shape: f32[8,1,128], index: 7, kind: output, shape index: {}]   ;;  %s834_s1 = inlined_call_operand.vmem [shape: s32[8], index: 1, kind: input, shape index: {}]  }
   0x1   :  { %s12_s26 = sshll.u32 %s827_s0, 4  ;;  %s16_s29 = sshll.u32 %s834_s1, 4  ;;  %s13_s26 = int_to_ptr.vmem [resolvable:$true] %s12_s26  ;;  %s17_s29 = int_to_ptr.vmem [resolvable:$true] %s16_s29 }
   0x2   :  { %s548_s30 = scalar_lea.vmem %s13_s26, 16  ;;  %p553_p1 = scmp.lt.s32.totalorder %s13_s26, %s13_s26 }
   0x3   :  { %p549_p0 = scmp.ne.s32.totalorder %s13_s26, %s548_s30  ;;  %p554_p2 = scmp.lt.s32.totalorder %s548_s30, %s548_s30 }
   0x5   :  { %p555_p3 = por %p554_p2, %p553_p1 }
   0x7   :  { %p556_p4 = pnand %p555_p3, %p549_p0 }
   0x9   :  { %559 = shalt.err (!%p556_p4)  }
   0xa   :  { %s638_s8 = smov [#allocation3]   ;;  %s560_s9 = scalar_lea.vmem %s17_s29, 16 }
   0xb   :  { %15 = dma.vmem_to_smem %s13_s26, 16, %s638_s8, [#allocation2] }
   0xc   :  { %p561_p5 = scmp.ne.s32.totalorder %s17_s29, %s560_s9  ;;  %p565_p6 = scmp.lt.s32.totalorder %s17_s29, %s17_s29 }
   0xd   :  { %p566_p7 = scmp.lt.s32.totalorder %s560_s9, %s560_s9 }
   0xf   :  { %p567_p8 = por %p566_p7, %p565_p6 }
  0x11   :  { %p568_p9 = pnand %p567_p8, %p561_p5 }
  0x13   :  { %571 = shalt.err (!%p568_p9)  }
  0x14   :  { %s639_s0 = smov [#allocation4]  }
  0x15   :  { %19 = dma.vmem_to_smem %s17_s29, 16, %s639_s0, [#allocation2] }
  0x16   :  { %616 = dma.done.wait [#allocation2], 32 }
  0x17   :  { %617 = vsyncadd [#allocation2], 4294967264 }
  0x18   :  { %21 = sfence }
  0x19   :  { %22 = vsyncpa [#allocation6], 0 }
  0x1a   :  { %24 = vsyncpa [#allocation6 + $0x1], 0  ;;  %s688_s1 = smov 0   ;;  %s690_s10 = smov 0  }
  0x1b   :  { %s692_s11 = smov 0   ;;  %s694_s12 = smov 0  }
  0x1c LB: > { %s709_s13 = sadd.s32 4294967295, %s636_s12   ;;  %s483_s14 = sadd.s32 4294967294, %s636_s12   ;;  %s636_s12 = sphi %s694_s12, %s840_s12   ;;  %s632_s11 = sphi %s692_s11, %s839_s11   ;;  %s628_s10 = sphi %s690_s10, %s838_s10   ;;  %s624_s1 = sphi %s688_s1, %s837_s1  }
  0x1d   : > { %s713_s15 = sadd.s32 1, %s636_s12   ;;  %s161_s16 = sadd.s32 1, %s632_s11 }
  0x1e   : > { %s158_s17 = ssub.s32 %s636_s12, %s713_s15  ;;  %p171_p10 = scmp.ne.s32.totalorder %s632_s11, %s628_s10 }
  0x1f   : > { %p159_p11 = scmp.eq.s32.totalorder %s158_s17, 0  ;;  %p172_p12 = scmp.eq.s32.totalorder %s709_s13, 7 }
  0x20   : > { %p177_p13 = scmp.ne.s32.totalorder %s628_s10, %s624_s1  ;;  %p178_p0 = scmp.eq.s32.totalorder %s483_s14, 7 }
  0x21   : > { %s724_s18 = scalar_select %p159_p11, %s632_s11, %s161_s16  }
  0x22   : > { %p726_p1 = por %p172_p12, %p171_p10  ;;  %p730_p2 = por %p178_p0, %p177_p13 }
  0x23   : > { %p486_p3 = scmp.ge.s32.totalorder %s636_s12, 1  ;;  %p228_p4 = scmp.lt.s32.totalorder %s636_s12, 9 }
  0x25   : > { %p229_p5 = pnand %p486_p3, %p228_p4 }
  0x26   : > { %p265_p6 = scmp.lt.s32.totalorder (!%p229_p5), %s709_s13, 7  ;;  %v640_v0 = vmov (!%p229_p5), 0   ;;  %s270_s26 = sld [smem:[#allocation3 + %s709_s13]] (!%p229_p5)  ;;  %v288_v5 = vld [vmem:[%s829_s3] sm:$0xff] (!%p229_p5)  ;;  %v290_v9 = vld [vmem:[%s829_s3 + $0x10] sm:$0xff] (!%p229_p5)  ;;  %v289_v13 = vld [vmem:[%s829_s3 + $0x8] sm:$0xff] (!%p229_p5)  ;;  %v342_v63 = vlaneseq (!%p229_p5) }
  0x27   : > { %232 = sbr.rel (%p229_p5) target bundleno = 540 (0x21c), region = 40  ;;  %539 = vset.pattern.permute.xlu1 (!%p229_p5), %v640_v0  ;;  %538 = vset.pattern.permute.xlu0 (!%p229_p5), %v640_v0  ;;  %vm316_vm0 = vcmask (!%p229_p5), 64512   ;;  %v291_v15 = vld [vmem:[%s829_s3 + $0x18] sm:$0xff] (!%p229_p5)  ;;  %s277_s23 = sld [smem:[#allocation3 + %s709_s13]] (!%p229_p5)  ;;  %v330_v50 = vld [vmem:[%s830_s4] sm:$0x1] (!%p229_p5) }
  0x28   : > { %vm332_vm1 = vcmask (!%p229_p5), 57344   ;;  %s282_s29 = sld [smem:[#allocation3 + %s709_s13]] (!%p229_p5)  ;;  %v343_v0 = vand.u32 (!%p229_p5), 127, %v342_v63  ;;  %s263_s8 = sand.u32 (!%p229_p5), 1, %s628_s10  }
  0x29   : > { %s491_s9 = sshll.u32 (!%p229_p5), %s709_s13, 4  ;;  %s264_s0 = scalar_lea.vmem (!%p229_p5), [#allocation5], %s263_s8 }
  0x2a   : > { %s407_s14 = sshll.u32 (!%p229_p5), %s264_s0, 4  ;;  %s787_s14 = int_to_ptr.vmem [resolvable:$true] %s407_s14 }
  0x2c   : > { %p271_p7 = scmp.lt.s32.totalorder (!%p229_p5), %s270_s26, 7 }
  0x2d   : > { %p278_p8 = scmp.lt.s32.totalorder (!%p229_p5), %s277_s23, 7 }
  0x2e   : > { %s266_s21 = scalar_select %p265_p6, %s709_s13, 7 }
  0x2f   : > { %s842_s26 = smov (!%p271_p7, %s270_s26), 7  ;;  %s844_s23 = smov (!%p278_p8, %s277_s23), 7 }
  0x30   : > { %s494_s22 = sshll.u32 %s266_s21, 5  ;;  %s495_s27 = sshll.u32 %s842_s26, 5 }
  0x31   : > { %s269_s25 = scalar_lea.vmem %s828_s2, %s494_s22  ;;  %s275_s30 = scalar_lea.vmem %s831_s5, %s495_s27 }
  0x32   : > { %v286_v1 = vld [vmem:[%s269_s25 + $0x10] sm:$0xff]  ;;  %v284_v2 = vld [vmem:[%s269_s25] sm:$0xff]  ;;  %v287_v3 = vld [vmem:[%s269_s25 + $0x18] sm:$0xff]  ;;  %s280_s26 = scalar_lea.vmem %s832_s6, %s844_s23  ;;  %s785_s21 = scalar_lea.hbm %s833_s7, %s491_s9 }
  0x33   : > { %304 = vperm.xlu1 %539, %v286_v1   ;;  %294 = vperm.xlu0 %538, %v284_v2   ;;  %v285_v4 = vld [vmem:[%s269_s25 + $0x8] sm:$0xff]  ;;  %v352_v6 = vld [vmem:[%s275_s30] sm:$0xff]  ;;  %v354_v10 = vld [vmem:[%s275_s30 + $0x10] sm:$0xff]  ;;  %v344_v1 = vstv %s282_s29  ;;  %s395_s22 = scalar_lea.sflag [#allocation6], %s263_s8  ;;  %s572_s23 = scalar_lea.vmem %s787_s14, 16 }
  0x34   : > { %v353_v14 = vld [vmem:[%s275_s30 + $0x8] sm:$0xff]  ;;  %v355_v16 = vld [vmem:[%s275_s30 + $0x18] sm:$0xff]  ;;  %v373_v49 = vld [vmem:[%s280_s26] sm:$0x1]  ;;  %s283_s30 = sld [smem:[#allocation4 + %s709_s13]]  ;;  %vm345_vm2 = vcmp.eq.s32.totalorder %v343_v0, %v344_v1  ;;  %p573_p9 = scmp.ne.s32.totalorder %s787_s14, %s572_s23 }
  0x35   : > { %s641_s13 = smov [#allocation5]  }
  0x36   : > { %p574_p10 = pnand %p573_p9, %p726_p1  ;;  %s576_s24 = sshll.u32 %s641_s13, 4  ;;  %s577_s24 = int_to_ptr.vmem [resolvable:$false] %s576_s24 }
  0x37   : > { %309 = vperm.xlu1 %539, %v287_v3   ;;  %299 = vperm.xlu0 %538, %v285_v4   ;;  %s578_s25 = scalar_lea.vmem %s577_s24, 32  ;;  %p579_p12 = scmp.lt.s32.totalorder %s787_s14, %s577_s24 }
  0x38   : > { %p575_p11 = pneg %p574_p10  ;;  %p580_p13 = scmp.lt.s32.totalorder %s578_s25, %s572_s23 }
  0x3a   : > { %v384_v3 = vstv %s283_s30  ;;  %p581_p0 = por %p580_p13, %p579_p12 }
  0x3b   : > { %vm385_vm3 = vcmp.eq.s32.totalorder %v343_v0, %v384_v3 }
  0x3c   : > { %p582_p3 = pnand %p581_p0, %p575_p11 }
  0xb2   : > { %v305_v7 = vpop.permute.xlu1 %304  ;;  %v295_v8 = vpop.permute.xlu0 %294 }
  0xb3   : > { %v312_v11 = vmul.f32 %v295_v8, %v288_v5  ;;  %v356_v12 = vmul.f32 %v352_v6, %v295_v8  ;;  %v314_v19 = vmul.f32 %v305_v7, %v290_v9  ;;  %v358_v20 = vmul.f32 %v354_v10, %v305_v7 }
  0xb5   : > { %v317_v23 = vsel %vm316_vm0, %v312_v11, 0.0  ;;  %v360_v24 = vsel %vm316_vm0, %v356_v12, 0.0  ;;  %v320_v31 = vsel %vm316_vm0, %v314_v19, 0.0  ;;  %v363_v32 = vsel %vm316_vm0, %v358_v20, 0.0 }
  0xb6   : > { %v310_v17 = vpop.permute.xlu1 %309  ;;  %v300_v18 = vpop.permute.xlu0 %299 }
  0xb7   : > { %v313_v21 = vmul.f32 %v300_v18, %v289_v13  ;;  %v357_v22 = vmul.f32 %v353_v14, %v300_v18  ;;  %v315_v25 = vmul.f32 %v310_v17, %v291_v15  ;;  %v359_v26 = vmul.f32 %v355_v16, %v310_v17 }
  0xb9   : > { %v318_v27 = vsel %vm316_vm0, %v313_v21, 0.0  ;;  %v361_v28 = vsel %vm316_vm0, %v357_v22, 0.0  ;;  %v322_v35 = vsel %vm316_vm0, %v315_v25, 0.0  ;;  %v365_v36 = vsel %vm316_vm0, %v359_v26, 0.0 }
  0xba   : > { %v319_v29 = vadd.f32 %v318_v27, %v317_v23  ;;  %v362_v30 = vadd.f32 %v361_v28, %v360_v24 }
  0xbc   : > { %v321_v33 = vadd.f32 %v320_v31, %v319_v29  ;;  %v364_v34 = vadd.f32 %v363_v32, %v362_v30 }
  0xbe   : > { %v323_v37 = vadd.f32 %v322_v35, %v321_v33  ;;  %v366_v38 = vadd.f32 %v365_v36, %v364_v34 }
  0xc0   : > { %v367_v39 = vrot.slane %v366_v38, 4  ;;  %v324_v40 = vrot.slane %v323_v37, 4 }
  0xc2   : > { %v368_v41 = vadd.f32 %v367_v39, %v366_v38  ;;  %v325_v42 = vadd.f32 %v324_v40, %v323_v37 }
  0xc4   : > { %v369_v43 = vrot.slane %v368_v41, 2  ;;  %v326_v44 = vrot.slane %v325_v42, 2 }
  0xc6   : > { %v370_v45 = vadd.f32 %v369_v43, %v368_v41  ;;  %v327_v46 = vadd.f32 %v326_v44, %v325_v42 }
  0xc8   : > { %v371_v47 = vrot.slane %v370_v45, 1  ;;  %v328_v48 = vrot.slane %v327_v46, 1 }
  0xca   : > { %v372_v51 = vadd.f32 %v371_v47, %v370_v45  ;;  %v329_v52 = vadd.f32 %v328_v48, %v327_v46 }
  0xcc   : > { %v374_v53 = vadd.f32 %v373_v49, %v372_v51  ;;  %v331_v54 = vadd.f32 %v330_v50, %v329_v52 }
  0xce   : > { %v375_v55 = vsel %vm332_vm1, %v374_v53, -inf  ;;  %v333_v56 = vsel %vm332_vm1, %v331_v54, -inf }
  0xcf   : > { %376 = vmax.xlane.f32.xlu1 %v375_v55  ;;  %334 = vmax.xlane.f32.xlu0 %v333_v56 }
 0x15c   : > { %v377_v57 = vpop.xlane.xlu1 %376  ;;  %v335_v58 = vpop.xlane.xlu0 %334 }
 0x15d   : > { %v378_v59 = vsub.f32 %v374_v53, %v377_v57  ;;  %v336_v60 = vsub.f32 %v331_v54, %v335_v58 }
 0x15f   : > { %v337_v61 = vmul.f32 1.442695, %v336_v60  ;;  %v379_v62 = vmul.f32 1.442695, %v378_v59 }
 0x161   : > { %540 = vpow2.f32 %v337_v61 }
 0x162   : > { %542 = vpow2.f32 %v379_v62 }
 0x16b   : > { %v541_v2 = vpop.eup %540 }
 0x16c   : > { %v339_v4 = vsel %vm332_vm1, %v541_v2, 0.0  ;;  %v346_v5 = vsel %vm345_vm2, %v541_v2, 0.0  ;;  %v543_v6 = vpop.eup %542 }
 0x16d   : > { %340 = vadd.xlane.f32.xlu0 %v339_v4  ;;  %v347_v7 = vsel %vm332_vm1, %v346_v5, 0.0  ;;  %v381_v8 = vsel %vm332_vm1, %v543_v6, 0.0  ;;  %v386_v9 = vsel %vm385_vm3, %v543_v6, 0.0 }
 0x16e   : > { %348 = vadd.xlane.f32.xlu1 %v347_v7  ;;  %v387_v10 = vsel %vm332_vm1, %v386_v9, 0.0 }
 0x171   : > { %382 = vadd.xlane.f32.xlu0 %v381_v8 }
 0x175   : > { %388 = vadd.xlane.f32.xlu0 %v387_v10 }
 0x1fa   : > { %v341_v11 = vpop.xlane.xlu0 %340 }
 0x1fb   : > { %544 = vrcp.f32 %v341_v11  ;;  %v349_v15 = vpop.xlane.xlu1 %348 }
 0x1fe   : > { %v383_v12 = vpop.xlane.xlu0 %382 }
 0x1ff   : > { %546 = vrcp.f32 %v383_v12 }
 0x202   : > { %v389_v16 = vpop.xlane.xlu0 %388 }
 0x205   : > { %v545_v13 = vpop.eup %544 }
 0x206   : > { %v351_v17 = vmul.f32 %v545_v13, %v349_v15 }
 0x209   : > { %v547_v14 = vpop.eup %546 }
 0x20a   : > { %v391_v18 = vmul.f32 %v547_v14, %v389_v16 }
 0x20c   : > { %v392_v19 = vmul.f32 %v391_v18, %v351_v17 }
 0x20e   : > { %393 = vst [vmem:[%s264_s0] sm:$0x1] %v392_v19 }
 0x20f   : > { %585 = shalt.err (!%p582_p3)
}
 0x210   : > { %s586_s26 = scalar_lea.hbm %s785_s21, 16  ;;  %s590_s29 = scalar_lea.hbm %s833_s7, 128 }
 0x211   : > { %p587_p4 = scmp.ne.s32.totalorder %s785_s21, %s586_s26  ;;  %p591_p7 = scmp.lt.u32.totalorder %s785_s21, %s833_s7 }
 0x212   : > { %p592_p8 = scmp.lt.u32.totalorder %s590_s29, %s586_s26  ;;  %p594_p10 = scmp.lt.u32.totalorder %s586_s26, %s785_s21 }
 0x213   : > { %p588_p5 = pnand %p587_p4, %p726_p1 }
 0x214   : > { %p593_p9 = por %p592_p8, %p591_p7 }
 0x215   : > { %p589_p6 = pneg %p588_p5 }
 0x216   : > { %p595_p11 = por %p594_p10, %p593_p9 }
 0x218   : > { %p596_p12 = pnand %p595_p11, %p589_p6 }
 0x21a   : > { %599 = shalt.err (!%p596_p12)
}
 0x21b   : > { %496 = dma.vmem_to_hbm [thread:$0]  (%p726_p1), %s787_s14, 16, %s785_s21, %s395_s22  }
 0x21c PF: > { %p502_p13 = scmp.ge.s32.totalorder %s636_s12, 2  ;;  %s419_s9 = sand.u32 1, %s624_s1  }
 0x21d   : > { %s420_s0 = scalar_lea.sflag [#allocation6], %s419_s9 }
 0x21e   : > { %p499_p0 = pnand %p502_p13, %p730_p2 }
 0x220   : > { %619 = dma.done.wait (!%p499_p0), %s420_s0, 16  }
 0x221   : > { %621 = vsyncadd (!%p499_p0), %s420_s0, 4294967280  ;;  %p27_p3 = scmp.ge.s32.totalorder %s713_s15, 10   ;;  %s837_s1 = smov %s628_s10 }
 0x222   : > { %s838_s10 = smov %s632_s11  ;;  %s839_s11 = smov %s724_s18 }
 0x223   : > { %s840_s12 = smov %s713_s15  ;;  %29 = sbr.rel (!%p27_p3) target bundleno = 28 (0x1c), region = 81 }
 0x22a   :  { %424 = vsyncpa [#allocation6], 1 }
 0x22b   :  { %426 = vsyncpa [#allocation6 + $0x1], 1 }

</bundles_post_ra>
